<compile_context>
chip_gen: v6e
topology: v6e:2x2x1
jax: 0.10.0
libtpu: 0.0.40
codegen_flags: <defaults>
</compile_context>

<pallas_src>
import math
import functools

import jax
import jax.numpy as jnp
from jax import lax
from jax.experimental import pallas as pl
from jax.experimental.pallas import tpu as pltpu


def encoder_kernel(x_ref, mask_ref,
                   wq_ref, bq_ref, wkv_ref, bkv_ref,
                   wo_ref, bo_ref, gamma_ref, beta_ref,
                   out_ref,
                   kv_ref,
                   *, num_head, dim_head, q_tile, mm_dtype, approx_recip):
    f32 = jnp.float32
    D = num_head * dim_head
    TQ = q_tile
    qi = pl.program_id(1)

    # Fused K|V projection over the full sequence: computed once per batch
    # (qi == 0) into the persistent VMEM scratch, reused by later query tiles.
    @pl.when(qi == 0)
    def _():
        x_all = x_ref[...].astype(mm_dtype)                       # (S, D)
        kv = jnp.dot(x_all, wkv_ref[...],
                     preferred_element_type=f32) + bkv_ref[...]   # (S, 2D) f32
        # Cast immediately so the f32 (S, 2D) temp does not stay live.
        kv_ref[...] = kv.astype(mm_dtype)

    # Query tile sliced straight out of the already-resident x block.
    start = pl.multiple_of(qi * TQ, TQ)
    x_q = x_ref[pl.ds(start, TQ), :]                              # (TQ, D) f32

    # Q projection; fold the 1/sqrt(dim_head) scale in once.
    scale = 1.0 / math.sqrt(dim_head)
    q = (jnp.dot(x_q.astype(mm_dtype), wq_ref[...],
                 preferred_element_type=f32) + bq_ref[...]) * scale
    q = q.astype(mm_dtype)                                        # (TQ, D)

    # Mask kept as a (1, S) row; implicit sublane broadcast inside jnp.where.
    masked = mask_ref[...] == 0.0                                 # (1, S) bool

    # Per-head attention; each head's context is folded directly into the
    # output projection accumulator (no lane-narrow (TQ, dh) stores).
    acc = jnp.zeros((TQ, D), f32)
    for h in range(num_head):
        lo = h * dim_head
        qh = q[:, lo:lo + dim_head]                   # (TQ, dh)
        kh = kv_ref[:, lo:lo + dim_head]              # (S, dh)  mm_dtype
        vh = kv_ref[:, D + lo:D + lo + dim_head]      # (S, dh)  mm_dtype

        # q @ k^T without materializing a transpose: contract the dh axis.
        scores = lax.dot_general(
            qh, kh, dimension_numbers=(((1,), (1,)), ((), ())),
            preferred_element_type=f32)                           # (TQ, S)
        # exact masked_fill(mask == 0, -1e9) semantics
        scores = jnp.where(masked, -1e9, scores)

        # numerically stable softmax
        smax = jnp.max(scores, axis=-1, keepdims=True)
        e = jnp.exp(scores - smax)
        denom = jnp.sum(e, axis=-1, keepdims=True)
        if approx_recip:
            p = e * pl.reciprocal(denom, approx=True)             # EUP slot
        else:
            p = e / denom

        ctx = jnp.dot(p.astype(mm_dtype), vh,
                      preferred_element_type=f32)                 # (TQ, dh)
        acc = acc + jnp.dot(ctx.astype(mm_dtype),
                            wo_ref[lo:lo + dim_head, :],
                            preferred_element_type=f32)           # (TQ, D)

    out = acc + bo_ref[...]                                       # output proj bias

    # Residual.  TODO(synk): att_dropout is identity (inference semantics).
    res = x_q + out

    # LayerNorm over the last dim, eps = 1e-5, two-pass variance.
    mean = jnp.mean(res, axis=-1, keepdims=True)
    cent = res - mean
    var = jnp.mean(cent * cent, axis=-1, keepdims=True)
    y = cent * lax.rsqrt(var + 1e-5)
    out_ref[...] = y * gamma_ref[...] + beta_ref[...]


def encoder_forward(x, mask, params, num_head, *, q_tile=256,
                    use_bf16_matmul=True, approx_recip=True):
    B, S, D = x.shape
    dim_head = D // num_head
    TQ = min(S, q_tile)
    assert S % TQ == 0, "sequence length must divide the query tile"
    n_q = S // TQ

    mask3 = mask.reshape(B, 1, S).astype(jnp.float32)

    mm_dtype = jnp.bfloat16 if use_bf16_matmul else jnp.float32
    wq = params["wq"].astype(mm_dtype)
    wkv = jnp.concatenate([params["wk"], params["wv"]], axis=1).astype(mm_dtype)
    bkv = jnp.concatenate([params["bk"], params["bv"]], axis=1)
    wo = params["wo"].astype(mm_dtype)

    kernel = functools.partial(encoder_kernel, num_head=num_head,
                               dim_head=dim_head, q_tile=TQ,
                               mm_dtype=mm_dtype, approx_recip=approx_recip)

    def rep(shape):
        # replicated (grid-invariant) operand
        return pl.BlockSpec(shape, lambda b, qi: (0,) * len(shape))

    # Advisory cost hint so XLA overlaps the surrounding weight casts/concat.
    flops = int(B * (2 * S * D * 2 * D          # fused K|V projection
                     + 2 * S * D * D            # Q projection
                     + 2 * 2 * S * S * D        # QK^T + P@V over all heads
                     + 2 * S * D * D))          # output projection
    transcendentals = int(B * num_head * S * S)                  # softmax exps
    bytes_accessed = int(4 * (2 * B * S * D + B * S + 4 * D * D + 6 * D))

    return pl.pallas_call(
        kernel,
        out_shape=jax.ShapeDtypeStruct((B, S, D), jnp.float32),
        grid=(B, n_q),
        in_specs=[
            pl.BlockSpec((None, S, D), lambda b, qi: (b, 0, 0)),   # x (full seq)
            pl.BlockSpec((None, 1, S), lambda b, qi: (b, 0, 0)),   # mask row
            rep((D, D)), rep((1, D)),                              # Wq, bq
            rep((D, 2 * D)), rep((1, 2 * D)),                      # W[k|v], b[k|v]
            rep((D, D)), rep((1, D)),                              # Wo, bo
            rep((1, D)), rep((1, D)),                              # gamma, beta
        ],
        out_specs=pl.BlockSpec((None, TQ, D), lambda b, qi: (b, qi, 0)),
        scratch_shapes=[pltpu.VMEM((S, 2 * D), mm_dtype)],         # persistent K|V
        compiler_params=pltpu.CompilerParams(
            # qi must be 'arbitrary' so the per-batch K|V scratch is reused
            # sequentially across query tiles; b stays 'parallel' for megacore.
            dimension_semantics=("parallel", "arbitrary"),
            # 48 MiB fits v7x's 64 MiB VMEM; raise toward ~100 MiB on v5e/v6e
            # (128 MiB physical) when running long sequences.
            vmem_limit_bytes=48 * 1024 * 1024),
        cost_estimate=pl.CostEstimate(flops=flops,
                                      transcendentals=transcendentals,
                                      bytes_accessed=bytes_accessed),
    )(x, mask3,
      wq, params["bq"], wkv, bkv, wo, params["bo"],
      params["gamma"], params["beta"])


def init_params(key, dim_model):
    ks = jax.random.split(key, 8)
    scale = 1.0 / math.sqrt(dim_model)

    def lin(kw, kb):
        w = jax.random.uniform(kw, (dim_model, dim_model), jnp.float32, -scale, scale)
        b = jax.random.uniform(kb, (1, dim_model), jnp.float32, -scale, scale)
        return w, b

    wq, bq = lin(ks[0], ks[1])
    wk, bk = lin(ks[2], ks[3])
    wv, bv = lin(ks[4], ks[5])
    wo, bo = lin(ks[6], ks[7])
    return dict(
        wq=wq, bq=bq, wk=wk, bk=bk, wv=wv, bv=bv, wo=wo, bo=bo,
        gamma=jnp.ones((1, dim_model), jnp.float32),
        beta=jnp.zeros((1, dim_model), jnp.float32),
    )


def encoder_reference(x, mask, params, num_head):
    # Pure-JAX f32 reference mirroring the PyTorch module.
    B, S, D = x.shape
    dh = D // num_head
    q = (x @ params["wq"] + params["bq"]).reshape(B, S, num_head, dh).transpose(0, 2, 1, 3)
    k = (x @ params["wk"] + params["bk"]).reshape(B, S, num_head, dh).transpose(0, 2, 1, 3)
    v = (x @ params["wv"] + params["bv"]).reshape(B, S, num_head, dh).transpose(0, 2, 1, 3)
    scores = jnp.einsum("bhqd,bhkd->bhqk", q, k) / math.sqrt(dh)
    m = mask.reshape(B, 1, 1, S)
    scores = jnp.where(m == 0.0, -1e9, scores)
    p = jax.nn.softmax(scores, axis=-1)
    ctx = jnp.einsum("bhqk,bhkd->bhqd", p, v).transpose(0, 2, 1, 3).reshape(B, S, D)
    out = ctx @ params["wo"] + params["bo"]
    res = x + out
    mean = res.mean(-1, keepdims=True)
    var = ((res - mean) ** 2).mean(-1, keepdims=True)
    y = (res - mean) / jnp.sqrt(var + 1e-5)
    return y * params["gamma"] + params["beta"]


if __name__ == "__main__":
    B, S, D = 2, 8, 32
    num_head = 4

    key = jax.random.PRNGKey(0)
    kx, kp = jax.random.split(key, 2)

    x = jax.random.normal(kx, (B, S, D), dtype=jnp.float32)
    # mask: first batch fully valid, second batch masks out the last 3 positions
    mask = jnp.ones((B, S), dtype=jnp.float32)
    mask = mask.at[1, S - 3:].set(0.0)

    params = init_params(kp, D)
    ref = encoder_reference(x, mask, params, num_head)

    # f32 matmul path, exact softmax reciprocal (tight check)
    out_f32 = encoder_forward(x, mask, params, num_head,
                              use_bf16_matmul=False, approx_recip=False)
    jax.block_until_ready(out_f32)
    assert out_f32.shape == (B, S, D)
    err_f32 = float(jnp.max(jnp.abs(out_f32 - ref)))
    assert err_f32 < 2e-2, f"f32 kernel mismatch: {err_f32}"

    # bf16-input / f32-accumulate MXU path with EUP reciprocal (loose check)
    out_bf16 = encoder_forward(x, mask, params, num_head,
                               use_bf16_matmul=True, approx_recip=True)
    jax.block_until_ready(out_bf16)
    assert out_bf16.shape == (B, S, D)
    err_bf16 = float(jnp.max(jnp.abs(out_bf16 - ref)))
    assert err_bf16 < 1.5e-1, f"bf16 kernel mismatch: {err_bf16}"

    print("KERNEL_OK")
</pallas_src>

<mosaic_0001>
module attributes {stable_mosaic.version = 11 : i64} {
  func.func @encoder_kernel(%arg0: i32, %arg1: i32, %arg2: memref<1x8x32xf32, #tpu.memory_space<vmem>>, %arg3: memref<1x1x8xf32, #tpu.memory_space<vmem>>, %arg4: memref<32x32xf32, #tpu.memory_space<vmem>>, %arg5: memref<1x32xf32, #tpu.memory_space<vmem>>, %arg6: memref<32x64xf32, #tpu.memory_space<vmem>>, %arg7: memref<1x64xf32, #tpu.memory_space<vmem>>, %arg8: memref<32x32xf32, #tpu.memory_space<vmem>>, %arg9: memref<1x32xf32, #tpu.memory_space<vmem>>, %arg10: memref<1x32xf32, #tpu.memory_space<vmem>>, %arg11: memref<1x32xf32, #tpu.memory_space<vmem>>, %arg12: memref<1x8x32xf32, #tpu.memory_space<vmem>>, %arg13: memref<8x64xf32, #tpu.memory_space<vmem>>) attributes {dimension_semantics = [#tpu.dimension_semantics<parallel>, #tpu.dimension_semantics<arbitrary>], iteration_bounds = array<i64: 2, 1>, scalar_prefetch = 0 : i64, scratch_operands = 1 : i64, tpu.core_type = #tpu.core_type<tc>, window_params = [{transform_indices = @transform_0, window_bounds = array<i64: 1, 8, 32>}, {transform_indices = @transform_1, window_bounds = array<i64: 1, 1, 8>}, {pipeline_mode = #tpu.pipeline_mode<synchronous>, transform_indices = @transform_2, window_bounds = array<i64: 32, 32>}, {pipeline_mode = #tpu.pipeline_mode<synchronous>, transform_indices = @transform_3, window_bounds = array<i64: 1, 32>}, {pipeline_mode = #tpu.pipeline_mode<synchronous>, transform_indices = @transform_4, window_bounds = array<i64: 32, 64>}, {pipeline_mode = #tpu.pipeline_mode<synchronous>, transform_indices = @transform_5, window_bounds = array<i64: 1, 64>}, {pipeline_mode = #tpu.pipeline_mode<synchronous>, transform_indices = @transform_6, window_bounds = array<i64: 32, 32>}, {pipeline_mode = #tpu.pipeline_mode<synchronous>, transform_indices = @transform_7, window_bounds = array<i64: 1, 32>}, {pipeline_mode = #tpu.pipeline_mode<synchronous>, transform_indices = @transform_8, window_bounds = array<i64: 1, 32>}, {pipeline_mode = #tpu.pipeline_mode<synchronous>, transform_indices = @transform_9, window_bounds = array<i64: 1, 32>}, {transform_indices = @transform_10, window_bounds = array<i64: 1, 8, 32>}]} {
    %c0_i32 = arith.constant 0 : i32
    %0 = arith.cmpi eq, %arg1, %c0_i32 : i32
    %1 = arith.extui %0 : i1 to i32
    %c0_i32_0 = arith.constant 0 : i32
    %2 = arith.cmpi ne, %1, %c0_i32_0 : i32
    scf.if %2 {
      %c0_67 = arith.constant 0 : index
      %c0_68 = arith.constant 0 : index
      %c0_69 = arith.constant 0 : index
      %133 = vector.load %arg2[%c0_67, %c0_68, %c0_69] : memref<1x8x32xf32, #tpu.memory_space<vmem>>, vector<1x8x32xf32>
      %134 = vector.shape_cast %133 : vector<1x8x32xf32> to vector<8x32xf32>
      %c0_70 = arith.constant 0 : index
      %c0_71 = arith.constant 0 : index
      %135 = vector.load %arg6[%c0_70, %c0_71] : memref<32x64xf32, #tpu.memory_space<vmem>>, vector<32x64xf32>
      %cst_72 = arith.constant dense<0.000000e+00> : vector<8x64xf32>
      %136 = tpu.matmul %134, %135, %cst_72 {dimension_numbers = #tpu.dot_dimension_numbers<[1], [0], [0], [1], [0, 0, 1, 1], [], []>} : vector<8x32xf32>, vector<32x64xf32>, vector<8x64xf32> -> vector<8x64xf32>
      %c0_73 = arith.constant 0 : index
      %c0_74 = arith.constant 0 : index
      %137 = vector.load %arg7[%c0_73, %c0_74] : memref<1x64xf32, #tpu.memory_space<vmem>>, vector<1x64xf32>
      %138 = vector.broadcast %137 : vector<1x64xf32> to vector<8x64xf32>
      %139 = arith.addf %136, %138 : vector<8x64xf32>
      %c0_75 = arith.constant 0 : index
      %c0_76 = arith.constant 0 : index
      %140 = vector.load %arg13[%c0_75, %c0_76] : memref<8x64xf32, #tpu.memory_space<vmem>>, vector<8x64xf32>
      tpu.vector_store %arg13[%c0_75, %c0_76], %139 {strides = array<i32>} : memref<8x64xf32, #tpu.memory_space<vmem>>, vector<8x64xf32>,
    } else {
    }
    %c8_i32 = arith.constant 8 : i32
    %3 = arith.muli %arg1, %c8_i32 : i32
    %4 = tpu.assume_multiple %3, 8 : i32
    %c0 = arith.constant 0 : index
    %5 = arith.index_cast %4 : i32 to index
    %c0_1 = arith.constant 0 : index
    %6 = vector.load %arg2[%c0, %5, %c0_1] : memref<1x8x32xf32, #tpu.memory_space<vmem>>, vector<1x8x32xf32>
    %7 = vector.shape_cast %6 : vector<1x8x32xf32> to vector<8x32xf32>
    %c0_2 = arith.constant 0 : index
    %c0_3 = arith.constant 0 : index
    %8 = vector.load %arg4[%c0_2, %c0_3] : memref<32x32xf32, #tpu.memory_space<vmem>>, vector<32x32xf32>
    %cst = arith.constant dense<0.000000e+00> : vector<8x32xf32>
    %9 = tpu.matmul %7, %8, %cst {dimension_numbers = #tpu.dot_dimension_numbers<[1], [0], [0], [1], [0, 0, 1, 1], [], []>} : vector<8x32xf32>, vector<32x32xf32>, vector<8x32xf32> -> vector<8x32xf32>
    %c0_4 = arith.constant 0 : index
    %c0_5 = arith.constant 0 : index
    %10 = vector.load %arg5[%c0_4, %c0_5] : memref<1x32xf32, #tpu.memory_space<vmem>>, vector<1x32xf32>
    %11 = vector.broadcast %10 : vector<1x32xf32> to vector<8x32xf32>
    %12 = arith.addf %9, %11 : vector<8x32xf32>
    %cst_6 = arith.constant 0.353553385 : f32
    %13 = vector.broadcast %cst_6 : f32 to vector<8x32xf32>
    %14 = arith.mulf %12, %13 : vector<8x32xf32>
    %c0_7 = arith.constant 0 : index
    %c0_8 = arith.constant 0 : index
    %c0_9 = arith.constant 0 : index
    %15 = vector.load %arg3[%c0_7, %c0_8, %c0_9] : memref<1x1x8xf32, #tpu.memory_space<vmem>>, vector<1x1x8xf32>
    %16 = vector.shape_cast %15 : vector<1x1x8xf32> to vector<1x8xf32>
    %cst_10 = arith.constant 0.000000e+00 : f32
    %17 = vector.broadcast %cst_10 : f32 to vector<1x8xf32>
    %18 = arith.cmpf oeq, %16, %17 : vector<1x8xf32>
    %cst_11 = arith.constant 0.000000e+00 : f32
    %19 = vector.broadcast %cst_11 : f32 to vector<8x32xf32>
    %20 = vector.extract_strided_slice %14 {offsets = [0, 0], sizes = [8, 8], strides = [1, 1]} : vector<8x32xf32> to vector<8x8xf32>
    %c0_12 = arith.constant 0 : index
    %c0_13 = arith.constant 0 : index
    %21 = vector.load %arg13[%c0_12, %c0_13] : memref<8x64xf32, #tpu.memory_space<vmem>>, vector<8x8xf32>
    %c0_14 = arith.constant 0 : index
    %c32 = arith.constant 32 : index
    %22 = vector.load %arg13[%c0_14, %c32] : memref<8x64xf32, #tpu.memory_space<vmem>>, vector<8x8xf32>
    %cst_15 = arith.constant dense<0.000000e+00> : vector<8x8xf32>
    %23 = tpu.matmul %20, %21, %cst_15 {dimension_numbers = #tpu.dot_dimension_numbers<[1], [1], [0], [0], [0, 0, 1, 0], [], []>} : vector<8x8xf32>, vector<8x8xf32>, vector<8x8xf32> -> vector<8x8xf32>
    %cst_16 = arith.constant -1.000000e+09 : f32
    %24 = vector.shape_cast %18 : vector<1x8xi1> to vector<1x8xi1>
    %25 = vector.broadcast %24 : vector<1x8xi1> to vector<8x8xi1>
    %26 = vector.broadcast %cst_16 : f32 to vector<8x8xf32>
    %27 = arith.select %25, %26, %23 : vector<8x8xi1>, vector<8x8xf32>
    %cst_17 = arith.constant dense<0xFF800000> : vector<8xf32>
    %28 = vector.multi_reduction <maximumf>, %27, %cst_17 [1] : vector<8x8xf32> to vector<8xf32>
    %29 = vector.shape_cast %28 : vector<8xf32> to vector<8x1xf32>
    %30 = vector.broadcast %29 : vector<8x1xf32> to vector<8x8xf32>
    %31 = arith.subf %27, %30 : vector<8x8xf32>
    %32 = math.exp %31 : vector<8x8xf32>
    %cst_18 = arith.constant dense<0.000000e+00> : vector<8xf32>
    %33 = vector.multi_reduction <add>, %32, %cst_18 [1] : vector<8x8xf32> to vector<8xf32>
    %34 = vector.shape_cast %33 : vector<8xf32> to vector<8x1xf32>
    %35 = vector.broadcast %34 : vector<8x1xf32> to vector<8x8xf32>
    %36 = arith.divf %32, %35 : vector<8x8xf32>
    %cst_19 = arith.constant dense<0.000000e+00> : vector<8x8xf32>
    %37 = tpu.matmul %36, %22, %cst_19 {dimension_numbers = #tpu.dot_dimension_numbers<[1], [0], [0], [1], [0, 0, 1, 1], [], []>} : vector<8x8xf32>, vector<8x8xf32>, vector<8x8xf32> -> vector<8x8xf32>
    %c0_20 = arith.constant 0 : index
    %c0_21 = arith.constant 0 : index
    %38 = vector.load %arg8[%c0_20, %c0_21] : memref<32x32xf32, #tpu.memory_space<vmem>>, vector<8x32xf32>
    %cst_22 = arith.constant dense<0.000000e+00> : vector<8x32xf32>
    %39 = tpu.matmul %37, %38, %cst_22 {dimension_numbers = #tpu.dot_dimension_numbers<[1], [0], [0], [1], [0, 0, 1, 1], [], []>} : vector<8x8xf32>, vector<8x32xf32>, vector<8x32xf32> -> vector<8x32xf32>
    %40 = arith.addf %19, %39 : vector<8x32xf32>
    %41 = vector.extract_strided_slice %14 {offsets = [0, 8], sizes = [8, 8], strides = [1, 1]} : vector<8x32xf32> to vector<8x8xf32>
    %c0_23 = arith.constant 0 : index
    %c8 = arith.constant 8 : index
    %42 = vector.load %arg13[%c0_23, %c8] : memref<8x64xf32, #tpu.memory_space<vmem>>, vector<8x8xf32>
    %c0_24 = arith.constant 0 : index
    %c40 = arith.constant 40 : index
    %43 = vector.load %arg13[%c0_24, %c40] : memref<8x64xf32, #tpu.memory_space<vmem>>, vector<8x8xf32>
    %cst_25 = arith.constant dense<0.000000e+00> : vector<8x8xf32>
    %44 = tpu.matmul %41, %42, %cst_25 {dimension_numbers = #tpu.dot_dimension_numbers<[1], [1], [0], [0], [0, 0, 1, 0], [], []>} : vector<8x8xf32>, vector<8x8xf32>, vector<8x8xf32> -> vector<8x8xf32>
    %cst_26 = arith.constant -1.000000e+09 : f32
    %45 = vector.shape_cast %18 : vector<1x8xi1> to vector<1x8xi1>
    %46 = vector.broadcast %45 : vector<1x8xi1> to vector<8x8xi1>
    %47 = vector.broadcast %cst_26 : f32 to vector<8x8xf32>
    %48 = arith.select %46, %47, %44 : vector<8x8xi1>, vector<8x8xf32>
    %cst_27 = arith.constant dense<0xFF800000> : vector<8xf32>
    %49 = vector.multi_reduction <maximumf>, %48, %cst_27 [1] : vector<8x8xf32> to vector<8xf32>
    %50 = vector.shape_cast %49 : vector<8xf32> to vector<8x1xf32>
    %51 = vector.broadcast %50 : vector<8x1xf32> to vector<8x8xf32>
    %52 = arith.subf %48, %51 : vector<8x8xf32>
    %53 = math.exp %52 : vector<8x8xf32>
    %cst_28 = arith.constant dense<0.000000e+00> : vector<8xf32>
    %54 = vector.multi_reduction <add>, %53, %cst_28 [1] : vector<8x8xf32> to vector<8xf32>
    %55 = vector.shape_cast %54 : vector<8xf32> to vector<8x1xf32>
    %56 = vector.broadcast %55 : vector<8x1xf32> to vector<8x8xf32>
    %57 = arith.divf %53, %56 : vector<8x8xf32>
    %cst_29 = arith.constant dense<0.000000e+00> : vector<8x8xf32>
    %58 = tpu.matmul %57, %43, %cst_29 {dimension_numbers = #tpu.dot_dimension_numbers<[1], [0], [0], [1], [0, 0, 1, 1], [], []>} : vector<8x8xf32>, vector<8x8xf32>, vector<8x8xf32> -> vector<8x8xf32>
    %c8_30 = arith.constant 8 : index
    %c0_31 = arith.constant 0 : index
    %59 = vector.load %arg8[%c8_30, %c0_31] : memref<32x32xf32, #tpu.memory_space<vmem>>, vector<8x32xf32>
    %cst_32 = arith.constant dense<0.000000e+00> : vector<8x32xf32>
    %60 = tpu.matmul %58, %59, %cst_32 {dimension_numbers = #tpu.dot_dimension_numbers<[1], [0], [0], [1], [0, 0, 1, 1], [], []>} : vector<8x8xf32>, vector<8x32xf32>, vector<8x32xf32> -> vector<8x32xf32>
    %61 = arith.addf %40, %60 : vector<8x32xf32>
    %62 = vector.extract_strided_slice %14 {offsets = [0, 16], sizes = [8, 8], strides = [1, 1]} : vector<8x32xf32> to vector<8x8xf32>
    %c0_33 = arith.constant 0 : index
    %c16 = arith.constant 16 : index
    %63 = vector.load %arg13[%c0_33, %c16] : memref<8x64xf32, #tpu.memory_space<vmem>>, vector<8x8xf32>
    %c0_34 = arith.constant 0 : index
    %c48 = arith.constant 48 : index
    %64 = vector.load %arg13[%c0_34, %c48] : memref<8x64xf32, #tpu.memory_space<vmem>>, vector<8x8xf32>
    %cst_35 = arith.constant dense<0.000000e+00> : vector<8x8xf32>
    %65 = tpu.matmul %62, %63, %cst_35 {dimension_numbers = #tpu.dot_dimension_numbers<[1], [1], [0], [0], [0, 0, 1, 0], [], []>} : vector<8x8xf32>, vector<8x8xf32>, vector<8x8xf32> -> vector<8x8xf32>
    %cst_36 = arith.constant -1.000000e+09 : f32
    %66 = vector.shape_cast %18 : vector<1x8xi1> to vector<1x8xi1>
    %67 = vector.broadcast %66 : vector<1x8xi1> to vector<8x8xi1>
    %68 = vector.broadcast %cst_36 : f32 to vector<8x8xf32>
    %69 = arith.select %67, %68, %65 : vector<8x8xi1>, vector<8x8xf32>
    %cst_37 = arith.constant dense<0xFF800000> : vector<8xf32>
    %70 = vector.multi_reduction <maximumf>, %69, %cst_37 [1] : vector<8x8xf32> to vector<8xf32>
    %71 = vector.shape_cast %70 : vector<8xf32> to vector<8x1xf32>
    %72 = vector.broadcast %71 : vector<8x1xf32> to vector<8x8xf32>
    %73 = arith.subf %69, %72 : vector<8x8xf32>
    %74 = math.exp %73 : vector<8x8xf32>
    %cst_38 = arith.constant dense<0.000000e+00> : vector<8xf32>
    %75 = vector.multi_reduction <add>, %74, %cst_38 [1] : vector<8x8xf32> to vector<8xf32>
    %76 = vector.shape_cast %75 : vector<8xf32> to vector<8x1xf32>
    %77 = vector.broadcast %76 : vector<8x1xf32> to vector<8x8xf32>
    %78 = arith.divf %74, %77 : vector<8x8xf32>
    %cst_39 = arith.constant dense<0.000000e+00> : vector<8x8xf32>
    %79 = tpu.matmul %78, %64, %cst_39 {dimension_numbers = #tpu.dot_dimension_numbers<[1], [0], [0], [1], [0, 0, 1, 1], [], []>} : vector<8x8xf32>, vector<8x8xf32>, vector<8x8xf32> -> vector<8x8xf32>
    %c16_40 = arith.constant 16 : index
    %c0_41 = arith.constant 0 : index
    %80 = vector.load %arg8[%c16_40, %c0_41] : memref<32x32xf32, #tpu.memory_space<vmem>>, vector<8x32xf32>
    %cst_42 = arith.constant dense<0.000000e+00> : vector<8x32xf32>
    %81 = tpu.matmul %79, %80, %cst_42 {dimension_numbers = #tpu.dot_dimension_numbers<[1], [0], [0], [1], [0, 0, 1, 1], [], []>} : vector<8x8xf32>, vector<8x32xf32>, vector<8x32xf32> -> vector<8x32xf32>
    %82 = arith.addf %61, %81 : vector<8x32xf32>
    %83 = vector.extract_strided_slice %14 {offsets = [0, 24], sizes = [8, 8], strides = [1, 1]} : vector<8x32xf32> to vector<8x8xf32>
    %c0_43 = arith.constant 0 : index
    %c24 = arith.constant 24 : index
    %84 = vector.load %arg13[%c0_43, %c24] : memref<8x64xf32, #tpu.memory_space<vmem>>, vector<8x8xf32>
    %c0_44 = arith.constant 0 : index
    %c56 = arith.constant 56 : index
    %85 = vector.load %arg13[%c0_44, %c56] : memref<8x64xf32, #tpu.memory_space<vmem>>, vector<8x8xf32>
    %cst_45 = arith.constant dense<0.000000e+00> : vector<8x8xf32>
    %86 = tpu.matmul %83, %84, %cst_45 {dimension_numbers = #tpu.dot_dimension_numbers<[1], [1], [0], [0], [0, 0, 1, 0], [], []>} : vector<8x8xf32>, vector<8x8xf32>, vector<8x8xf32> -> vector<8x8xf32>
    %cst_46 = arith.constant -1.000000e+09 : f32
    %87 = vector.shape_cast %18 : vector<1x8xi1> to vector<1x8xi1>
    %88 = vector.broadcast %87 : vector<1x8xi1> to vector<8x8xi1>
    %89 = vector.broadcast %cst_46 : f32 to vector<8x8xf32>
    %90 = arith.select %88, %89, %86 : vector<8x8xi1>, vector<8x8xf32>
    %cst_47 = arith.constant dense<0xFF800000> : vector<8xf32>
    %91 = vector.multi_reduction <maximumf>, %90, %cst_47 [1] : vector<8x8xf32> to vector<8xf32>
    %92 = vector.shape_cast %91 : vector<8xf32> to vector<8x1xf32>
    %93 = vector.broadcast %92 : vector<8x1xf32> to vector<8x8xf32>
    %94 = arith.subf %90, %93 : vector<8x8xf32>
    %95 = math.exp %94 : vector<8x8xf32>
    %cst_48 = arith.constant dense<0.000000e+00> : vector<8xf32>
    %96 = vector.multi_reduction <add>, %95, %cst_48 [1] : vector<8x8xf32> to vector<8xf32>
    %97 = vector.shape_cast %96 : vector<8xf32> to vector<8x1xf32>
    %98 = vector.broadcast %97 : vector<8x1xf32> to vector<8x8xf32>
    %99 = arith.divf %95, %98 : vector<8x8xf32>
    %cst_49 = arith.constant dense<0.000000e+00> : vector<8x8xf32>
    %100 = tpu.matmul %99, %85, %cst_49 {dimension_numbers = #tpu.dot_dimension_numbers<[1], [0], [0], [1], [0, 0, 1, 1], [], []>} : vector<8x8xf32>, vector<8x8xf32>, vector<8x8xf32> -> vector<8x8xf32>
    %c24_50 = arith.constant 24 : index
    %c0_51 = arith.constant 0 : index
    %101 = vector.load %arg8[%c24_50, %c0_51] : memref<32x32xf32, #tpu.memory_space<vmem>>, vector<8x32xf32>
    %cst_52 = arith.constant dense<0.000000e+00> : vector<8x32xf32>
    %102 = tpu.matmul %100, %101, %cst_52 {dimension_numbers = #tpu.dot_dimension_numbers<[1], [0], [0], [1], [0, 0, 1, 1], [], []>} : vector<8x8xf32>, vector<8x32xf32>, vector<8x32xf32> -> vector<8x32xf32>
    %103 = arith.addf %82, %102 : vector<8x32xf32>
    %c0_53 = arith.constant 0 : index
    %c0_54 = arith.constant 0 : index
    %104 = vector.load %arg9[%c0_53, %c0_54] : memref<1x32xf32, #tpu.memory_space<vmem>>, vector<1x32xf32>
    %105 = vector.broadcast %104 : vector<1x32xf32> to vector<8x32xf32>
    %106 = arith.addf %103, %105 : vector<8x32xf32>
    %107 = arith.addf %7, %106 : vector<8x32xf32>
    %cst_55 = arith.constant dense<0.000000e+00> : vector<8xf32>
    %108 = vector.multi_reduction <add>, %107, %cst_55 [1] : vector<8x32xf32> to vector<8xf32>
    %109 = vector.shape_cast %108 : vector<8xf32> to vector<8x1xf32>
    %cst_56 = arith.constant 3.200000e+01 : f32
    %110 = vector.broadcast %cst_56 : f32 to vector<8x1xf32>
    %111 = arith.divf %109, %110 : vector<8x1xf32>
    %112 = vector.broadcast %111 : vector<8x1xf32> to vector<8x32xf32>
    %113 = arith.subf %107, %112 : vector<8x32xf32>
    %114 = arith.mulf %113, %113 : vector<8x32xf32>
    %cst_57 = arith.constant dense<0.000000e+00> : vector<8xf32>
    %115 = vector.multi_reduction <add>, %114, %cst_57 [1] : vector<8x32xf32> to vector<8xf32>
    %116 = vector.shape_cast %115 : vector<8xf32> to vector<8x1xf32>
    %cst_58 = arith.constant 3.200000e+01 : f32
    %117 = vector.broadcast %cst_58 : f32 to vector<8x1xf32>
    %118 = arith.divf %116, %117 : vector<8x1xf32>
    %cst_59 = arith.constant 9.99999974E-6 : f32
    %119 = vector.broadcast %cst_59 : f32 to vector<8x1xf32>
    %120 = arith.addf %118, %119 : vector<8x1xf32>
    %121 = math.rsqrt %120 : vector<8x1xf32>
    %122 = vector.broadcast %121 : vector<8x1xf32> to vector<8x32xf32>
    %123 = arith.mulf %113, %122 : vector<8x32xf32>
    %c0_60 = arith.constant 0 : index
    %c0_61 = arith.constant 0 : index
    %124 = vector.load %arg10[%c0_60, %c0_61] : memref<1x32xf32, #tpu.memory_space<vmem>>, vector<1x32xf32>
    %125 = vector.broadcast %124 : vector<1x32xf32> to vector<8x32xf32>
    %126 = arith.mulf %123, %125 : vector<8x32xf32>
    %c0_62 = arith.constant 0 : index
    %c0_63 = arith.constant 0 : index
    %127 = vector.load %arg11[%c0_62, %c0_63] : memref<1x32xf32, #tpu.memory_space<vmem>>, vector<1x32xf32>
    %128 = vector.broadcast %127 : vector<1x32xf32> to vector<8x32xf32>
    %129 = arith.addf %126, %128 : vector<8x32xf32>
    %c0_64 = arith.constant 0 : index
    %c0_65 = arith.constant 0 : index
    %c0_66 = arith.constant 0 : index
    %130 = vector.load %arg12[%c0_64, %c0_65, %c0_66] : memref<1x8x32xf32, #tpu.memory_space<vmem>>, vector<1x8x32xf32>
    %131 = vector.shape_cast %130 : vector<1x8x32xf32> to vector<8x32xf32>
    %132 = vector.shape_cast %129 : vector<8x32xf32> to vector<1x8x32xf32>
    tpu.vector_store %arg12[%c0_64, %c0_65, %c0_66], %132 {strides = array<i32>} : memref<1x8x32xf32, #tpu.memory_space<vmem>>, vector<1x8x32xf32>,
    return
  }
  func.func @transform_0(%arg0: i32, %arg1: i32) -> (i32, i32, i32) {
    %c0_i32 = arith.constant 0 : i32
    %c0_i32_0 = arith.constant 0 : i32
    %c0_i32_1 = arith.constant 0 : i32
    return %arg0, %c0_i32, %c0_i32_0 : i32, i32, i32
  }
  func.func @transform_1(%arg0: i32, %arg1: i32) -> (i32, i32, i32) {
    %c0_i32 = arith.constant 0 : i32
    %c0_i32_0 = arith.constant 0 : i32
    %c0_i32_1 = arith.constant 0 : i32
    return %arg0, %c0_i32, %c0_i32_0 : i32, i32, i32
  }
  func.func @transform_2(%arg0: i32, %arg1: i32) -> (i32, i32) {
    %c0_i32 = arith.constant 0 : i32
    %c0_i32_0 = arith.constant 0 : i32
    %c0_i32_1 = arith.constant 0 : i32
    return %c0_i32, %c0_i32_0 : i32, i32
  }
  func.func @transform_3(%arg0: i32, %arg1: i32) -> (i32, i32) {
    %c0_i32 = arith.constant 0 : i32
    %c0_i32_0 = arith.constant 0 : i32
    %c0_i32_1 = arith.constant 0 : i32
    return %c0_i32, %c0_i32_0 : i32, i32
  }
  func.func @transform_4(%arg0: i32, %arg1: i32) -> (i32, i32) {
    %c0_i32 = arith.constant 0 : i32
    %c0_i32_0 = arith.constant 0 : i32
    %c0_i32_1 = arith.constant 0 : i32
    return %c0_i32, %c0_i32_0 : i32, i32
  }
  func.func @transform_5(%arg0: i32, %arg1: i32) -> (i32, i32) {
    %c0_i32 = arith.constant 0 : i32
    %c0_i32_0 = arith.constant 0 : i32
    %c0_i32_1 = arith.constant 0 : i32
    return %c0_i32, %c0_i32_0 : i32, i32
  }
  func.func @transform_6(%arg0: i32, %arg1: i32) -> (i32, i32) {
    %c0_i32 = arith.constant 0 : i32
    %c0_i32_0 = arith.constant 0 : i32
    %c0_i32_1 = arith.constant 0 : i32
    return %c0_i32, %c0_i32_0 : i32, i32
  }
  func.func @transform_7(%arg0: i32, %arg1: i32) -> (i32, i32) {
    %c0_i32 = arith.constant 0 : i32
    %c0_i32_0 = arith.constant 0 : i32
    %c0_i32_1 = arith.constant 0 : i32
    return %c0_i32, %c0_i32_0 : i32, i32
  }
  func.func @transform_8(%arg0: i32, %arg1: i32) -> (i32, i32) {
    %c0_i32 = arith.constant 0 : i32
    %c0_i32_0 = arith.constant 0 : i32
    %c0_i32_1 = arith.constant 0 : i32
    return %c0_i32, %c0_i32_0 : i32, i32
  }
  func.func @transform_9(%arg0: i32, %arg1: i32) -> (i32, i32) {
    %c0_i32 = arith.constant 0 : i32
    %c0_i32_0 = arith.constant 0 : i32
    %c0_i32_1 = arith.constant 0 : i32
    return %c0_i32, %c0_i32_0 : i32, i32
  }
  func.func @transform_10(%arg0: i32, %arg1: i32) -> (i32, i32, i32) {
    %c0_i32 = arith.constant 0 : i32
    %c0_i32_0 = arith.constant 0 : i32
    return %arg0, %arg1, %c0_i32 : i32, i32, i32
  }
}

</mosaic_0001>

<bundles_post_ra>
// kernel: tpu_custom_call.1
= control target key start
LH: loop header
LB: loop body
LE: loop exit
PB: predicated region body
PF: predicated region fallthrough
CT: control target
= control target key end

     0   :  { %s2728_s0 = inlined_call_operand.hbm [shape: f32[2,8,32], index: 0, kind: input, shape index: {}]   ;;  %s2729_s1 = inlined_call_operand.hbm [shape: f32[2,1,8], index: 1, kind: input, shape index: {}]   ;;  %s2730_s2 = inlined_call_operand.hbm [shape: f32[32,32], index: 2, kind: input, shape index: {}]   ;;  %s2731_s3 = inlined_call_operand.vmem [shape: f32[1,32], index: 3, kind: input, shape index: {}]   ;;  %s2732_s4 = inlined_call_operand.hbm [shape: f32[32,64], index: 4, kind: input, shape index: {}]   ;;  %s2733_s5 = inlined_call_operand.vmem [shape: f32[1,64], index: 5, kind: input, shape index: {}]   ;;  %s2734_s6 = inlined_call_operand.hbm [shape: f32[32,32], index: 6, kind: input, shape index: {}]   ;;  %s2735_s7 = inlined_call_operand.vmem [shape: f32[1,32], index: 7, kind: input, shape index: {}]   ;;  %s2736_s8 = inlined_call_operand.vmem [shape: f32[1,32], index: 8, kind: input, shape index: {}]   ;;  %s2737_s9 = inlined_call_operand.vmem [shape: f32[1,32], index: 9, kind: input, shape index: {}]   ;;  %s2738_s10 = inlined_call_operand.hbm [shape: f32[2,8,32], index: 10, kind: output, shape index: {}]  }
   0x1   :  { %2747 = sst [smem:[#allocation24_spill]] %s2728_s0 }
   0x2   :  { %2748 = sst [smem:[#allocation25_spill]] %s2730_s2 }
   0x3   :  { %2749 = sst [smem:[#allocation26_spill]] %s2732_s4 }
   0x4   :  { %2750 = sst [smem:[#allocation27_spill]] %s2734_s6 }
   0x5   :  { %15 = vsyncpa [#allocation4], 0 }
   0x6   :  { %17 = vsyncpa [#allocation4 + $0x1], 0 }
   0x7   :  { %18 = vsyncpa [#allocation7], 0 }
   0x8   :  { %20 = vsyncpa [#allocation7 + $0x1], 0 }
   0x9   :  { %21 = vsyncpa [#allocation10], 0 }
   0xa   :  { %22 = vsyncpa [#allocation5], 0 }
   0xb   :  { %24 = vsyncpa [#allocation5 + $0x1], 0  ;;  %s2389_s13 = smov 0   ;;  %s2391_s14 = smov 0  }
   0xc   :  { %s2393_s15 = smov 0   ;;  %s2395_s16 = smov 0  }
   0xd   :  { %s2397_s17 = smov 0   ;;  %s2399_s18 = smov 0  }
   0xe LB: > { %2751 = sst [smem:[#allocation18_spill]] %s2294_s13  ;;  %s2420_s19 = sadd.s32 4294967295, %s2314_s18   ;;  %s2314_s18 = sphi %s2399_s18, %s30_s18   ;;  %s2310_s17 = sphi %s2397_s17, %s2784_s17   ;;  %s2306_s16 = sphi %s2395_s16, %s2783_s16   ;;  %s2302_s15 = sphi %s2393_s15, %s2779_s15   ;;  %s2298_s14 = sphi %s2391_s14, %s2782_s14   ;;  %s2294_s13 = sphi %s2389_s13, %s2781_s13  }
   0xf   : > { %2752 = sst [smem:[#allocation19_spill]] %s2302_s15  ;;  %s1802_s20 = sadd.s32 4294967294, %s2314_s18  }
  0x10   : > { %2753 = sst [smem:[#allocation20_spill]] %s2314_s18  ;;  %p62_p0 = scmp.ne.s32.totalorder %s2298_s14, %s2294_s13 }
  0x11   : > { %p2739_p1 = scmp.eq.s32.totalorder %s2420_s19, 0  ;;  %p288_p3 = scmp.eq.s32.totalorder %s1802_s20, 1 }
  0x12   : > { %p1803_p5 = scmp.ge.s32.totalorder %s2314_s18, 1  ;;  %p295_p7 = scmp.lt.s32.totalorder %s2314_s18, 3 }
  0x13   : > { %p2429_p4 = por %p2739_p1, %p62_p0  ;;  %p2434_p6 = por %p288_p3, %p62_p0 }
  0x14   : > { %p2439_p8 = pnand %p1803_p5, %p295_p7  ;;  %s2316_s24 = smov [#allocation8]  }
  0x15   : > { %s2754_s21 = scalar_select %p2429_p4, 1, 0 }
  0x16   : > { %s2755_s22 = scalar_select %p2434_p6, 1, 0 }
  0x17   : > { %s307_s25 = sshll.u32 %s2316_s24, 4  ;;  %p1978_p9 = pneg %p2439_p8  ;;  %s308_s25 = int_to_ptr.vmem [resolvable:$true] %s307_s25 }
  0x18   : > { %2756 = sst [smem:[#allocation21_spill]] %s2755_s22  ;;  %s2317_s27 = smov [#allocation9]  }
  0x19   : > { %p2448_p11 = pnand %p1978_p9, %p2739_p1  ;;  %s323_s28 = sshll.u32 %s2317_s27, 4  ;;  %s324_s28 = int_to_ptr.vmem [resolvable:$true] %s323_s28 }
  0x1a   : > { %s2318_s29 = smov [#allocation11]   ;;  %s2099_s11 = scalar_lea.vmem %s308_s25, 512 }
  0x1b   : > { %s339_s30 = sshll.u32 %s2318_s29, 4  ;;  %p2090_p12 = pneg %p2448_p11  ;;  %s340_s30 = int_to_ptr.vmem [resolvable:$true] %s339_s30 }
  0x1c   : > { %p2100_p13 = scmp.ne.s32.totalorder %s308_s25, %s2099_s11  ;;  %p2107_p5 = scmp.lt.s32.totalorder %s308_s25, %s308_s25 }
  0x1d   : > { %p2108_p7 = scmp.lt.s32.totalorder %s2099_s11, %s2099_s11 }
  0x1e   : > { %p2102_p0 = pnand %p2100_p13, %p2090_p12 }
  0x1f   : > { %p2109_p9 = por %p2108_p7, %p2107_p5 }
  0x20   : > { %p2103_p3 = pneg %p2102_p0 }
  0x22   : > { %p2110_p10 = pnand %p2109_p9, %p2103_p3 }
  0x24   : > { %2113 = shalt.err (!%p2110_p10)
}
  0x25   : > { %s2319_s12 = smov 128   ;;  %s2320_s20 = smov 8  }
  0x26   : > { %s2759_s2 = sld [smem:[#allocation25_spill]]  ;;  %s2125_s29 = scalar_lea.vmem %s324_s28, 512 }
  0x27   : > { %p2126_p1 = scmp.ne.s32.totalorder %s324_s28, %s2125_s29  ;;  %p2133_p2 = scmp.lt.s32.totalorder %s324_s28, %s324_s28 }
  0x28   : > { %p2134_p6 = scmp.lt.s32.totalorder %s2125_s29, %s2125_s29 }
  0x29   : > { %p2128_p13 = pnand %p2126_p1, %p2090_p12 }
  0x2a   : > { %p2135_p5 = por %p2134_p6, %p2133_p2 }
  0x2b   : > { %p2129_p0 = pneg %p2128_p13 }
  0x2c   : > { %1981 = dma.hbm_to_vmem [thread:$0]  (!%p2448_p11), %s2759_s2, 512, %s308_s25, [#allocation7], %s2319_s12, %s2319_s12, %s2320_s20  }
  0x2d   : > { %p2136_p3 = pnand %p2135_p5, %p2129_p0 }
  0x2f   : > { %2139 = shalt.err (!%p2136_p3)
}
  0x30   : > { %s2760_s4 = sld [smem:[#allocation26_spill]]  ;;  %s2151_s25 = scalar_lea.vmem %s340_s30, 512 }
  0x31   : > { %p2152_p10 = scmp.ne.s32.totalorder %s340_s30, %s2151_s25  ;;  %p2159_p9 = scmp.lt.s32.totalorder %s340_s30, %s340_s30 }
  0x32   : > { %p2160_p13 = scmp.lt.s32.totalorder %s2151_s25, %s2151_s25 }
  0x33   : > { %p2154_p7 = pnand %p2152_p10, %p2090_p12 }
  0x34   : > { %p2161_p4 = por %p2160_p13, %p2159_p9 }
  0x35   : > { %p2155_p1 = pneg %p2154_p7 }
  0x36   : > { %1984 = dma.hbm_to_vmem [thread:$0]  (!%p2448_p11), %s2760_s4, 512, %s324_s28, [#allocation10], %s2319_s12, %s2319_s12, %s2320_s20  }
  0x37   : > { %p2162_p2 = pnand %p2161_p4, %p2155_p1 }
  0x39   : > { %2165 = shalt.err (!%p2162_p2)
}
  0x3a   : > { %s2761_s6 = sld [smem:[#allocation27_spill]]  ;;  %s49_s22 = sadd.s32 1, %s2302_s15 }
  0x3b   : > { %s42_s28 = sadd.s32 1, %s2310_s17  ;;  %p56_p4 = scmp.ne.s32.totalorder %s2302_s15, %s2298_s14 }
  0x3c   : > { %p44_p6 = scmp.ge.s32.totalorder %s42_s28, 2  ;;  %p57_p12 = scmp.eq.s32.totalorder %s2314_s18, 0 }
  0x3d   : > { %p2762_p0 = scmp.eq.s32.totalorder %s2420_s19, 1  ;;  %p2002_p3 = scmp.lt.s32.totalorder %s2314_s18, 2 }
  0x3e   : > { %s2786_s28 = smov (%p44_p6, %s42_s28), 0  ;;  %p58_p10 = por %p57_p12, %p56_p4 }
  0x3f   : > { %p2485_p5 = por %p2762_p0, %p56_p4  ;;  %2764 = sst [smem:[#allocation22_spill]] %s2786_s28 }
  0x40   : > { %1987 = dma.hbm_to_vmem [thread:$0]  (!%p2448_p11), %s2761_s6, 512, %s340_s30, [#allocation10], %s2319_s12, %s2319_s12, %s2320_s20  }
  0x41   : > { %s2493_s29 = sand.u32 1, %s2302_s15   ;;  %s46_s30 = ssub.s32 %s2310_s17, %s2786_s28 }
  0x42   : > { %p47_p11 = scmp.eq.s32.totalorder %s46_s30, 0  ;;  %s1808_s12 = sshll.u32 %s2493_s29, 3 }
  0x43   : > { %s1809_s20 = sshll.u32 %s2310_s17, 7  ;;  %s2766_s0 = sld [smem:[#allocation24_spill]] }
  0x44   : > { %s2500_s11 = scalar_select %p47_p11, %s2302_s15, %s49_s22  }
  0x45   : > { %s366_s2 = scalar_lea.vmem [#allocation3], %s1808_s12  ;;  %p2507_p7 = pnand %p2002_p3, %p58_p10 }
  0x46   : > { %2765 = sst [smem:[#allocation23_spill]] %s2500_s11  ;;  %s373_s4 = sshll.u32 %s366_s2, 4  ;;  %s374_s4 = int_to_ptr.vmem [resolvable:$true] %s373_s4 }
  0x47   : > { %s380_s28 = sand.u32 1, %s2314_s18   ;;  %s363_s30 = scalar_lea.sflag [#allocation4], %s2493_s29 }
  0x48   : > { %p2168_p1 = pneg %p2507_p7  ;;  %s2179_s22 = scalar_lea.vmem %s374_s4, 128 }
  0x49   : > { %s371_s27 = scalar_lea.hbm %s2766_s0, %s1809_s20  ;;  %p2180_p9 = scmp.ne.s32.totalorder %s374_s4, %s2179_s22 }
  0x4a   : > { %s2321_s12 = smov [#allocation3]  }
  0x4b   : > { %p2182_p13 = pnand %p2180_p9, %p2168_p1  ;;  %s2184_s2 = sshll.u32 %s2321_s12, 4  ;;  %s2185_s2 = int_to_ptr.vmem [resolvable:$false] %s2184_s2 }
  0x4c   : > { %s2186_s20 = scalar_lea.vmem %s2185_s2, 256  ;;  %p2187_p4 = scmp.lt.s32.totalorder %s374_s4, %s2185_s2 }
  0x4d   : > { %p2183_p2 = pneg %p2182_p13  ;;  %p2188_p6 = scmp.lt.s32.totalorder %s2186_s20, %s2179_s22 }
  0x4f   : > { %p2189_p12 = por %p2188_p6, %p2187_p4 }
  0x51   : > { %p2190_p0 = pnand %p2189_p12, %p2183_p2 }
  0x53   : > { %2193 = shalt.err (!%p2190_p0)
}
  0x54   : > { %1991 = dma.hbm_to_vmem [thread:$0]  (!%p2507_p7), %s371_s27, 128, %s374_s4, %s363_s30  }
  0x55   : > { %s1810_s25 = sshll.u32 %s2310_s17, 4  ;;  %s383_s24 = scalar_lea.vmem [#allocation6], %s2493_s29 }
  0x56   : > { %s390_s0 = sshll.u32 %s383_s24, 4  ;;  %s388_s12 = scalar_lea.hbm %s2729_s1, %s1810_s25  ;;  %s391_s0 = int_to_ptr.vmem [resolvable:$true] %s390_s0 }
  0x57   : > { %s381_s18 = scalar_lea.sflag [#allocation7], %s380_s28  ;;  %s2207_s2 = scalar_lea.vmem %s391_s0, 16 }
  0x58   : > { %p2208_p3 = scmp.ne.s32.totalorder %s391_s0, %s2207_s2  ;;  %s2322_s22 = smov [#allocation6]  }
  0x59   : > { %s2212_s20 = sshll.u32 %s2322_s22, 4  ;;  %s2213_s20 = int_to_ptr.vmem [resolvable:$false] %s2212_s20 }
  0x5a   : > { %p2210_p10 = pnand %p2208_p3, %p2168_p1  ;;  %s2214_s13 = scalar_lea.vmem %s2213_s20, 32 }
  0x5b   : > { %p2215_p9 = scmp.lt.s32.totalorder %s391_s0, %s2213_s20  ;;  %p2216_p13 = scmp.lt.s32.totalorder %s2214_s13, %s2207_s2 }
  0x5c   : > { %p2211_p11 = pneg %p2210_p10 }
  0x5d   : > { %p2217_p2 = por %p2216_p13, %p2215_p9 }
  0x5f   : > { %p2218_p4 = pnand %p2217_p2, %p2211_p11 }
  0x61   : > { %2221 = shalt.err (!%p2218_p4)
}
  0x62   : > { %1994 = dma.hbm_to_vmem [thread:$0]  (!%p2507_p7), %s388_s12, 16, %s391_s0, %s381_s18  }
  0x63   : > { %399 = sbr.rel (%p2439_p8) target bundleno = 2879 (0xb3f), region = 60  ;;  %s2533_s4 = sand.u32 (!%p2439_p8), 1, %s2298_s14  }
  0x64   : > { %s1812_s15 = sshll.u32 (!%p2439_p8), %s2533_s4, 3  ;;  %s402_s28 = scalar_lea.sflag (!%p2439_p8), [#allocation4], %s2533_s4 }
  0x65   : > { %s2539_s13 = scalar_lea.vmem (!%p2439_p8), [#allocation3], %s1812_s15  ;;  %p2768_p1 = scmp.ne.s32.totalorder (!%p2439_p8), %s2754_s21, 0 }
  0x68   : > { %2273 = dma.done.wait (%p2768_p1), %s402_s28, 128  }
  0x69   : > { %2275 = vsyncadd (%p2768_p1), %s402_s28, 4294967168  ;;  %s410_s0 = sand.u32 1, %s2420_s19   ;;  %s413_s18 = scalar_lea.vmem [#allocation6], %s2533_s4 }
  0x6a   : > { %s411_s6 = scalar_lea.sflag [#allocation7], %s410_s0 }
  0x6b   : > { %2277 = dma.done.wait (%p2768_p1), %s411_s6, 16  }
  0x6c   : > { %2279 = vsyncadd (%p2768_p1), %s411_s6, 4294967280  ;;  %p2769_p8 = scmp.eq.s32.totalorder %s2420_s19, 0 }
  0x6e   : > { %2281 = dma.done.wait (%p2769_p8), [#allocation7], 512   ;;  %p2770_p7 = pmov %p2769_p8 }
  0x70   : > { %2283 = vsyncadd (%p2770_p7), [#allocation7], 4294966784  ;;  %p2771_p6 = pmov %p2770_p7 }
  0x72   : > { %2285 = dma.done.wait (%p2771_p6), [#allocation10], 1024   ;;  %p2772_p12 = pmov %p2771_p6 }
  0x73   : > { %v2323_v0 = vmov 0.0   ;;  %vm2324_vm0 = vmmov 0   ;;  %v474_v1 = vld [vmem:[#allocation9 + $0x18] sm:$0xff]  ;;  %v473_v2 = vld [vmem:[#allocation9 + $0x10] sm:$0xff]  ;;  %v472_v4 = vld [vmem:[#allocation9 + $0x8] sm:$0xff]  ;;  %vm482_vm1 = vcmask 261120   ;;  %v728_v22 = vlaneseq }
  0x74   : > { %2287 = vsyncadd (%p2772_p12), [#allocation10], 4294966272  ;;  %1878 = vmatprep.subr.mxu0 %v2323_v0  ;;  %1886 = vmatprep.mubr.msk.f32.mxu0 %vm2324_vm0, %v2323_v0  ;;  %v564_v3 = vld [vmem:[#allocation8 + $0x18] sm:$0xff]  ;;  %v563_v5 = vld [vmem:[#allocation8 + $0x10] sm:$0xff]  ;;  %vm556_vm2 = vcmask 523264   ;;  %vm650_vm3 = vcmask 64512  }
  0x75   : > { %1889 = vmatprep.subr.mxu1 %v2323_v0  ;;  %1897 = vmatprep.mubr.msk.f32.mxu1 %vm2324_vm0, %v2323_v0  ;;  %v562_v6 = vld [vmem:[#allocation8 + $0x8] sm:$0xff]  ;;  %v471_v7 = vld [vmem:[#allocation9] sm:$0xff]  ;;  %s2325_s11 = smov 120   ;;  %v729_v24 = vshrl.u32 %v728_v22, 7  ;;  %v2326_v26 = vmov 0   ;;  %s2327_s27 = smov 96  }
  0x76   : > { %1879 = vmatpush3.msra.mxu0 %v474_v1  ;;  %1890 = vmatpush3.msra.mxu1 %v564_v3  ;;  %v2569_v8 = vld [vmem:[%s2539_s13] sm:$0xff]  ;;  %v561_v9 = vld [vmem:[#allocation8] sm:$0xff]  ;;  %s2328_s30 = smov 88   ;;  %s2329_s25 = smov 112  }
  0x77   : > { %1880 = vmatprep.subr.mxu0 %v2323_v0  ;;  %1891 = vmatprep.subr.mxu1 %v2323_v0  ;;  %v1817_v10 = vld [vmem:[%s2733_s5] ss:$0 sm:$0xff]  ;;  %v730_v25 = vsub.s32 0, %v729_v24  ;;  %v988_v51 = vld [vmem:[#allocation11 + $0x8] sm:$0xff]  ;;  %s2330_s24 = smov 80   ;;  %s2331_s12 = smov 104  }
  0x78   : > { %1881 = vmatpush3.msra.mxu0 %v473_v2  ;;  %1892 = vmatpush3.msra.mxu1 %v563_v5  ;;  %v1819_v15 = vld [vmem:[%s2731_s3] ss:$0 sm:$0xff]  ;;  %s2332_s2 = smov 72   ;;  %s465_s19 = scalar_lea.vmem [#allocation12], %s1812_s15 }
  0x79   : > { %1882 = vmatprep.subr.mxu0 %v2323_v0  ;;  %1893 = vmatprep.subr.mxu1 %v2323_v0  ;;  %v647_v23 = vld [vmem:[%s413_s18] sm:$0x1]  ;;  %s1841_s18 = sshll.u32 %s2306_s16, 7  ;;  %s1672_s21 = sshll.u32 %s465_s19, 4  ;;  %s1673_s21 = int_to_ptr.vmem [resolvable:$true] %s1672_s21 }
  0x7a   : > { %1883 = vmatpush3.msra.mxu0 %v472_v4  ;;  %1894 = vmatpush3.msra.mxu1 %v562_v6  ;;  %vm648_vm4 = vcmp.eq.f32.partialorder %v647_v23, 0.0  ;;  %v821_v56 = vld [vmem:[#allocation11] sm:$0xff] }
  0x7b   : > { %1884 = vmatprep.subr.mxu0 %v2323_v0  ;;  %1895 = vmatprep.subr.mxu1 %v2323_v0  ;;  %v727_v27 = vsel %vm648_vm4, 1, %v2326_v26 }
  0x7c   : > { %1885 = vmatpush3.msra.mxu0 %v471_v7  ;;  %1896 = vmatpush3.msra.mxu1 %v561_v9  ;;  %v2610_v28 = vrot.slane %v727_v27, %v730_v25 }
  0x7d   : > { %1887 = vmatmul.mubr.msk.f32.vlgmr.msra.gmra.mxu0 %vm482_vm1, %v2569_v8  ;;  %1898 = vmatmul.mubr.msk.f32.vlgmr.msra.gmra.mxu1 %vm482_vm1, %v2569_v8 }
  0x7e   : > { %1900 = vmatprep.subr.mxu0 %v2323_v0  ;;  %1902 = vmatprep.mubr.msk.f32.mxu0 %vm2324_vm0, %v2323_v0  ;;  %vm732_vm5 = vcmp.eq.s32.totalorder %v2610_v28, 1 }
  0x7f   : > { %1905 = vmatprep.subr.mxu1 %v2323_v0  ;;  %1907 = vmatprep.mubr.msk.f32.mxu1 %vm2324_vm0, %v2323_v0 }
 0x13d   : > { %v552_v11 = vpop.f32.mrf.mxu0  ;;  %v642_v13 = vpop.f32.mrf.mxu1 }
 0x13e   : > { %v553_v12 = vadd.f32 %v1817_v10, %v552_v11  ;;  %v643_v17 = vadd.f32 %v1819_v15, %v642_v13 }
 0x13f   : > { %v1888_v14 = vpop.f32.mrf.mxu0  ;;  %v1899_v16 = vpop.f32.mrf.mxu1 }
 0x140   : > { %557 = vst.msk [vmem:[#allocation2] sm:$0xff] %vm556_vm2, %v553_v12  ;;  %v2590_v18 = vmul.f32 0.35355338, %v643_v17 }
 0x147   : > { %v2592_v19 = vld [vmem:[#allocation2] sm:$0xff] }
 0x148   : > { %824 = vrot.lane.b32.xlu0 %v2592_v19, %s2325_s11  ;;  %1901 = vmatpush3.xpose.msk.msra.mxu0 %vm650_vm3, %v2592_v19 }
 0x149   : > { %1910 = vmatprep.subr.mxu0 %v2323_v0 }
 0x14b   : > { %1903 = vmatmul.mubr.msk.f32.vlgmr.msra.gmra.mxu0 %vm650_vm3, %v2590_v18 }
 0x14c   : > { %822 = vrot.lane.b32.xlu0 %v2590_v18, %s2325_s11  ;;  %1912 = vmatprep.mubr.msk.f32.mxu0 %vm2324_vm0, %v2323_v0  ;;  %s1670_s11 = scalar_lea.hbm %s2738_s10, %s1841_s18 }
 0x1ba   : > { %v825_v20 = vpop.permute.xlu0 %824 }
 0x1bb   : > { %1911 = vmatpush3.xpose.msk.msra.mxu0 %vm650_vm3, %v825_v20 }
 0x1bc   : > { %1920 = vmatprep.subr.mxu0 %v2323_v0 }
 0x1be   : > { %v823_v21 = vpop.permute.xlu0 %822 }
 0x1bf   : > { %1913 = vmatmul.mubr.msk.f32.vlgmr.msra.gmra.mxu0 %vm650_vm3, %v823_v21  ;;  %v1301_v21 = vld [vmem:[#allocation11 + $0x10] sm:$0xff] }
 0x1c0   : > { %1922 = vmatprep.mubr.msk.f32.mxu0 %vm2324_vm0, %v2323_v0  ;;  %1921 = vmatpush3.msra.mxu0 %v988_v51 }
 0x1c1   : > { %1930 = vmatprep.subr.mxu0 %v2323_v0 }
 0x20b   : > { %v723_v29 = vpop.f32.mrf.mxu0 }
 0x20c   : > { %v733_v30 = vsel %vm732_vm5, -1e+09, %v723_v29 }
 0x20d   : > { %v1904_v31 = vpop.f32.mrf.mxu0  ;;  %v734_v32 = vsel %vm650_vm3, %v733_v30, -inf }
 0x20e   : > { %735 = vmax.xlane.f32.xlu1 %v734_v32 }
 0x27f   : > { %v896_v33 = vpop.f32.mrf.mxu0 }
 0x280   : > { %v900_v34 = vsel %vm732_vm5, -1e+09, %v896_v33 }
 0x281   : > { %v1914_v35 = vpop.f32.mrf.mxu0  ;;  %v901_v36 = vsel %vm650_vm3, %v900_v34, -inf }
 0x282   : > { %902 = vmax.xlane.f32.xlu1 %v901_v36 }
 0x293   : > { %745 = vrot.lane.b32.xlu1 %v2592_v19, %s2327_s27  ;;  %s1658_s27 = scalar_lea.sflag [#allocation5], %s2533_s4 }
 0x297   : > { %v736_v37 = vpop.xlane.xlu1 %735 }
 0x298   : > { %v737_v38 = vsub.f32 %v733_v30, %v736_v37 }
 0x29a   : > { %v738_v39 = vmul.f32 1.442695, %v737_v38 }
 0x29c   : > { %2070 = vpow2.f32 %v738_v39 }
 0x2a9   : > { %v2071_v40 = vpop.eup %2070 }
 0x2aa   : > { %v740_v41 = vsel %vm650_vm3, %v2071_v40, 0.0 }
 0x2ab   : > { %741 = vadd.xlane.f32.xlu0 %v740_v41 }
 0x30b   : > { %v903_v42 = vpop.xlane.xlu1 %902 }
 0x30c   : > { %v904_v43 = vsub.f32 %v900_v34, %v903_v42 }
 0x30e   : > { %v905_v44 = vmul.f32 1.442695, %v904_v43 }
 0x30f   : > { %v746_v45 = vpop.permute.xlu1 %745 }
 0x310   : > { %2072 = vpow2.f32 %v905_v44  ;;  %1906 = vmatpush3.msra.mxu1 %v746_v45 }
 0x311   : > { %1915 = vmatprep.subr.mxu1 %v2323_v0 }
 0x31d   : > { %v2073_v46 = vpop.eup %2072 }
 0x31e   : > { %v907_v47 = vsel %vm650_vm3, %v2073_v46, 0.0 }
 0x31f   : > { %908 = vadd.xlane.f32.xlu1 %v907_v47 }
 0x330   : > { %912 = vrot.lane.b32.xlu1 %v2592_v19, %s2328_s30  ;;  %s2222_s30 = scalar_lea.vmem %s1673_s21, 128 }
 0x331   : > { %p2223_p0 = scmp.ne.s32.totalorder %s1673_s21, %s2222_s30 }
 0x333   : > { %p2224_p3 = pnand %p2223_p0, %p2485_p5 }
 0x334   : > { %v742_v48 = vpop.xlane.xlu0 %741  ;;  %1137 = vrot.lane.b32.xlu1 %v2592_v19, %s2329_s25 }
 0x335   : > { %2074 = vrcp.f32 %v742_v48  ;;  %p2225_p10 = pneg %p2224_p3 }
 0x338   : > { %1135 = vrot.lane.b32.xlu1 %v2590_v18, %s2329_s25  ;;  %s2333_s25 = smov [#allocation12]  }
 0x339   : > { %s2226_s16 = sshll.u32 %s2333_s25, 4  ;;  %s2227_s16 = int_to_ptr.vmem [resolvable:$false] %s2226_s16 }
 0x33a   : > { %s2228_s15 = scalar_lea.vmem %s2227_s16, 256  ;;  %p2229_p11 = scmp.lt.s32.totalorder %s1673_s21, %s2227_s16 }
 0x33b   : > { %p2230_p9 = scmp.lt.s32.totalorder %s2228_s15, %s2222_s30 }
 0x33d   : > { %p2231_p13 = por %p2230_p9, %p2229_p11 }
 0x33f   : > { %p2232_p2 = pnand %p2231_p13, %p2225_p10 }
 0x342   : > { %v2075_v49 = vpop.eup %2074 }
 0x343   : > { %v744_v50 = vmul.f32 %v2075_v49, %v2071_v40 }
 0x345   : > { %1908 = vmatmul.mubr.msk.f32.vlgmr.msra.gmra.mxu1 %vm650_vm3, %v744_v50 }
 0x346   : > { %1917 = vmatprep.mubr.msk.f32.mxu1 %vm2324_vm0, %v2323_v0 }
 0x3a8   : > { %v909_v52 = vpop.xlane.xlu1 %908 }
 0x3a9   : > { %2076 = vrcp.f32 %v909_v52 }
 0x3ac   : > { %v913_v53 = vpop.permute.xlu1 %912 }
 0x3ad   : > { %1916 = vmatpush3.msra.mxu1 %v913_v53 }
 0x3ae   : > { %1925 = vmatprep.subr.mxu1 %v2323_v0 }
 0x3b0   : > { %v1138_v59 = vpop.permute.xlu1 %1137 }
 0x3b4   : > { %v1136_v62 = vpop.permute.xlu1 %1135 }
 0x3b6   : > { %v2077_v54 = vpop.eup %2076 }
 0x3b7   : > { %v911_v55 = vmul.f32 %v2077_v54, %v2073_v46 }
 0x3b9   : > { %1918 = vmatmul.mubr.msk.f32.vlgmr.msra.gmra.mxu1 %vm650_vm3, %v911_v55 }
 0x3ba   : > { %1926 = vmatpush3.msra.mxu1 %v821_v56  ;;  %1927 = vmatprep.mubr.msk.f32.mxu1 %vm2324_vm0, %v2323_v0 }
 0x3bb   : > { %1935 = vmatprep.subr.mxu1 %v2323_v0 }
 0x405   : > { %v817_v57 = vpop.f32.mrf.mxu1 }
 0x406   : > { %1928 = vmatmul.mubr.msk.f32.vlgmr.msra.gmra.mxu1 %vm650_vm3, %v817_v57 }
 0x407   : > { %v1909_v58 = vpop.f32.mrf.mxu1  ;;  %1937 = vmatprep.mubr.msk.f32.mxu1 %vm2324_vm0, %v2323_v0 }
 0x479   : > { %v984_v60 = vpop.f32.mrf.mxu1 }
 0x47a   : > { %1923 = vmatmul.mubr.msk.f32.vlgmr.msra.gmra.mxu0 %vm650_vm3, %v984_v60 }
 0x47b   : > { %1931 = vmatpush3.xpose.msk.msra.mxu0 %vm650_vm3, %v1138_v59  ;;  %v1919_v61 = vpop.f32.mrf.mxu1  ;;  %1932 = vmatprep.mubr.msk.f32.mxu0 %vm2324_vm0, %v2323_v0  ;;  %v1839_v59 = vld [vmem:[%s2737_s9] ss:$0 sm:$0xff] }
 0x47c   : > { %1940 = vmatprep.subr.mxu0 %v2323_v0 }
 0x47e   : > { %1933 = vmatmul.mubr.msk.f32.vlgmr.msra.gmra.mxu0 %vm650_vm3, %v1136_v62 }
 0x47f   : > { %1942 = vmatprep.mubr.msk.f32.mxu0 %vm2324_vm0, %v2323_v0  ;;  %1941 = vmatpush3.msra.mxu0 %v1301_v21 }
 0x480   : > { %1950 = vmatprep.subr.mxu0 %v2323_v0 }
 0x4c6   : > { %v1131_v63 = vpop.f32.mrf.mxu1 }
 0x4c8   : > { %v1929_v1 = vpop.f32.mrf.mxu1 }
 0x53a   : > { %v1058_v2 = vpop.f32.mrf.mxu0 }
 0x53b   : > { %v1132_v34 = vadd.f32 %v1131_v63, %v1058_v2 }
 0x53c   : > { %v1924_v3 = vpop.f32.mrf.mxu0 }
 0x53e   : > { %v1209_v4 = vpop.f32.mrf.mxu0 }
 0x53f   : > { %v1213_v5 = vsel %vm732_vm5, -1e+09, %v1209_v4 }
 0x540   : > { %v1934_v6 = vpop.f32.mrf.mxu0  ;;  %v1214_v7 = vsel %vm650_vm3, %v1213_v5, -inf }
 0x541   : > { %1215 = vmax.xlane.f32.xlu0 %v1214_v7 }
 0x557   : > { %1225 = vrot.lane.b32.xlu0 %v2592_v19, %s2330_s24 }
 0x55b   : > { %1378 = vrot.lane.b32.xlu0 %v2592_v19, %s2331_s12 }
 0x55f   : > { %1376 = vrot.lane.b32.xlu0 %v2590_v18, %s2331_s12 }
 0x5ca   : > { %v1216_v9 = vpop.xlane.xlu0 %1215 }
 0x5cb   : > { %v1217_v10 = vsub.f32 %v1213_v5, %v1216_v9 }
 0x5cd   : > { %v1218_v11 = vmul.f32 1.442695, %v1217_v10 }
 0x5ce   : > { %v1226_v12 = vpop.permute.xlu0 %1225 }
 0x5cf   : > { %2078 = vpow2.f32 %v1218_v11  ;;  %1936 = vmatpush3.msra.mxu1 %v1226_v12 }
 0x5d0   : > { %1945 = vmatprep.subr.mxu1 %v2323_v0 }
 0x5d2   : > { %v1379_v17 = vpop.permute.xlu0 %1378 }
 0x5d6   : > { %v1377_v18 = vpop.permute.xlu0 %1376 }
 0x5dc   : > { %v2079_v13 = vpop.eup %2078 }
 0x5dd   : > { %v1220_v14 = vsel %vm650_vm3, %v2079_v13, 0.0 }
 0x5de   : > { %1221 = vadd.xlane.f32.xlu1 %v1220_v14 }
 0x667   : > { %v1222_v15 = vpop.xlane.xlu1 %1221 }
 0x668   : > { %2080 = vrcp.f32 %v1222_v15 }
 0x675   : > { %v2081_v16 = vpop.eup %2080 }
 0x676   : > { %v1224_v20 = vmul.f32 %v2081_v16, %v2079_v13 }
 0x678   : > { %1938 = vmatmul.mubr.msk.f32.vlgmr.msra.gmra.mxu1 %vm650_vm3, %v1224_v20 }
 0x679   : > { %1946 = vmatpush3.xpose.msk.msra.mxu1 %vm650_vm3, %v1379_v17  ;;  %1947 = vmatprep.mubr.msk.f32.mxu1 %vm2324_vm0, %v2323_v0 }
 0x67a   : > { %1955 = vmatprep.subr.mxu1 %v2323_v0 }
 0x67c   : > { %1948 = vmatmul.mubr.msk.f32.vlgmr.msra.gmra.mxu1 %vm650_vm3, %v1377_v18 }
 0x67d   : > { %1957 = vmatprep.mubr.msk.f32.mxu1 %vm2324_vm0, %v2323_v0 }
 0x738   : > { %v1297_v22 = vpop.f32.mrf.mxu1 }
 0x739   : > { %1943 = vmatmul.mubr.msk.f32.vlgmr.msra.gmra.mxu0 %vm650_vm3, %v1297_v22 }
 0x73a   : > { %v1939_v23 = vpop.f32.mrf.mxu1  ;;  %1952 = vmatprep.mubr.msk.f32.mxu0 %vm2324_vm0, %v2323_v0  ;;  %v1542_v0 = vld [vmem:[#allocation11 + $0x18] sm:$0xff] }
 0x73b   : > { %1956 = vmatpush3.msra.mxu1 %v1542_v0 }
 0x73c   : > { %v1450_v24 = vpop.f32.mrf.mxu1 }
 0x73d   : > { %v1454_v25 = vsel %vm732_vm5, -1e+09, %v1450_v24 }
 0x73e   : > { %v1949_v26 = vpop.f32.mrf.mxu1  ;;  %v1455_v27 = vsel %vm650_vm3, %v1454_v25, -inf }
 0x73f   : > { %1456 = vmax.xlane.f32.xlu0 %v1455_v27 }
 0x7c8   : > { %v1457_v29 = vpop.xlane.xlu0 %1456 }
 0x7c9   : > { %v1458_v30 = vsub.f32 %v1454_v25, %v1457_v29 }
 0x7cb   : > { %v1459_v31 = vmul.f32 1.442695, %v1458_v30 }
 0x7cd   : > { %2082 = vpow2.f32 %v1459_v31 }
 0x7da   : > { %v2083_v32 = vpop.eup %2082 }
 0x7db   : > { %v1461_v33 = vsel %vm650_vm3, %v2083_v32, 0.0 }
 0x7dc   : > { %1462 = vadd.xlane.f32.xlu1 %v1461_v33 }
 0x7ed   : > { %1466 = vrot.lane.b32.xlu1 %v2592_v19, %s2332_s2  ;;  %v1837_v19 = vld [vmem:[%s2735_s7] ss:$0 sm:$0xff] }
 0x7f9   : > { %v1371_v28 = vpop.f32.mrf.mxu0 }
 0x7fa   : > { %v1375_v35 = vadd.f32 %v1371_v28, %v1132_v34 }
 0x7fb   : > { %v1944_v36 = vpop.f32.mrf.mxu0 }
 0x865   : > { %v1463_v37 = vpop.xlane.xlu1 %1462 }
 0x866   : > { %2084 = vrcp.f32 %v1463_v37 }
 0x869   : > { %v1467_v38 = vpop.permute.xlu1 %1466 }
 0x86a   : > { %1951 = vmatpush3.msra.mxu0 %v1467_v38 }
 0x873   : > { %v2085_v39 = vpop.eup %2084 }
 0x874   : > { %v1465_v40 = vmul.f32 %v2085_v39, %v2083_v32 }
 0x876   : > { %1953 = vmatmul.mubr.msk.f32.vlgmr.msra.gmra.mxu0 %vm650_vm3, %v1465_v40 }
 0x936   : > { %v1538_v41 = vpop.f32.mrf.mxu0 }
 0x937   : > { %1958 = vmatmul.mubr.msk.f32.vlgmr.msra.gmra.mxu1 %vm650_vm3, %v1538_v41 }
 0x938   : > { %v1954_v42 = vpop.f32.mrf.mxu0 }
 0x9f7   : > { %v1612_v43 = vpop.f32.mrf.mxu1 }
 0x9f8   : > { %v1616_v44 = vadd.f32 %v1612_v43, %v1375_v35 }
 0x9f9   : > { %v1959_v45 = vpop.f32.mrf.mxu1 }
 0x9fa   : > { %v1624_v46 = vadd.f32 %v1837_v19, %v1616_v44 }
 0x9fc   : > { %v1625_v47 = vadd.f32 %v1624_v46, %v2569_v8  ;;  %v1838_v8 = vld [vmem:[%s2736_s8] ss:$0 sm:$0xff] }
 0x9fe   : > { %v1626_v48 = vsel %vm482_vm1, %v1625_v47, 0.0 }
 0x9ff   : > { %1627 = vadd.xlane.f32.xlu1 %v1626_v48 }
 0xa88   : > { %v1628_v49 = vpop.xlane.xlu1 %1627 }
 0xa89   : > { %v1630_v50 = vmul.f32 0.03125, %v1628_v49 }
 0xa8b   : > { %v1631_v51 = vsub.f32 %v1625_v47, %v1630_v50 }
 0xa8d   : > { %v1632_v52 = vmul.f32 %v1631_v51, %v1631_v51 }
 0xa8f   : > { %v1633_v53 = vsel %vm482_vm1, %v1632_v52, 0.0 }
 0xa90   : > { %1634 = vadd.xlane.f32.xlu0 %v1633_v53 }
 0xb19   : > { %v1635_v54 = vpop.xlane.xlu0 %1634 }
 0xb1a   : > { %v1636_v55 = vmul.f32 0.03125, %v1635_v54 }
 0xb1c   : > { %v1637_v56 = vadd.f32 1e-05, %v1636_v55 }
 0xb1e   : > { %2086 = vrsqrt.f32 %v1637_v56 }
 0xb2b   : > { %v2087_v57 = vpop.eup %2086 }
 0xb2c   : > { %v1639_v58 = vmul.f32 %v2087_v57, %v1631_v51 }
 0xb2e   : > { %v1647_v60 = vmul.f32 %v1838_v8, %v1639_v58 }
 0xb30   : > { %v1655_v61 = vadd.f32 %v1839_v59, %v1647_v60 }
 0xb32   : > { %1656 = vst.msk [vmem:[%s465_s19] sm:$0xff] %vm482_vm1, %v1655_v61 }
 0xb33   : > { %2235 = shalt.err (!%p2232_p2)
}
 0xb34   : > { %s2236_s24 = scalar_lea.hbm %s1670_s11, 128  ;;  %s2240_s2 = scalar_lea.hbm %s2738_s10, 256 }
 0xb35   : > { %p2237_p4 = scmp.ne.s32.totalorder %s1670_s11, %s2236_s24  ;;  %p2241_p7 = scmp.lt.s32.totalorder %s1670_s11, %s2738_s10 }
 0xb36   : > { %p2242_p6 = scmp.lt.s32.totalorder %s2240_s2, %s2236_s24 }
 0xb37   : > { %p2238_p1 = pnand %p2237_p4, %p2485_p5 }
 0xb38   : > { %p2243_p12 = por %p2242_p6, %p2241_p7 }
 0xb39   : > { %p2239_p8 = pneg %p2238_p1 }
 0xb3b   : > { %p2244_p0 = pnand %p2243_p12, %p2239_p8 }
 0xb3d   : > { %2247 = shalt.err (!%p2244_p0)
}
 0xb3e   : > { %1976 = dma.vmem_to_hbm [thread:$0]  (%p2485_p5), %s1673_s21, 128, %s1670_s11, %s1658_s27  }
 0xb3f PF: > { %s2773_s28 = sld [smem:[#allocation18_spill]] }
 0xb40   : > { %s2774_s13 = sld [smem:[#allocation21_spill]] }
 0xb41   : > { %s2775_s0 = sld [smem:[#allocation20_spill]] }
 0xb45   : > { %s1684_s6 = sand.u32 1, %s2773_s28  }
 0xb46   : > { %p2776_p3 = scmp.ne.s32.totalorder %s2774_s13, 0  ;;  %s1685_s18 = scalar_lea.sflag [#allocation5], %s1684_s6 }
 0xb47   : > { %p2777_p10 = scmp.ge.s32.totalorder %s2775_s0, 2 }
 0xb49   : > { %p1996_p11 = pnand %p2777_p10, %p2776_p3 }
 0xb4b   : > { %p1997_p9 = pneg %p1996_p11 }
 0xb4d   : > { %2289 = dma.done.wait (%p1997_p9), %s1685_s18, 128  }
 0xb4e   : > { %2291 = vsyncadd (%p1997_p9), %s1685_s18, 4294967168  ;;  %s30_s18 = sadd.s32 1, %s2775_s0   ;;  %s2778_s19 = sld [smem:[#allocation19_spill]] }
 0xb4f   : > { %p27_p13 = scmp.ge.s32.totalorder %s30_s18, 4   ;;  %s2779_s15 = sld [smem:[#allocation23_spill]] }
 0xb50   : > { %s2780_s26 = sld [smem:[#allocation22_spill]]  ;;  %s2781_s13 = smov %s2298_s14 }
 0xb51   : > { %s2783_s16 = smov %s2310_s17 }
 0xb52   :  { %29 = sbr.rel (!%p27_p13) target bundleno = 14 (0xe), region = 135 }
 0xb54   : > { %s2782_s14 = smov %s2778_s19 }
 0xb56   : > { %s2784_s17 = smov %s2780_s26 }
 0xb57   :  { %1690 = vsyncpa [#allocation4], 1 }
 0xb58   :  { %1692 = vsyncpa [#allocation4 + $0x1], 1 }
 0xb59   :  { %1693 = vsyncpa [#allocation7], 1 }
 0xb5a   :  { %1695 = vsyncpa [#allocation7 + $0x1], 1 }
 0xb5b   :  { %1696 = vsyncpa [#allocation10], 1 }
 0xb5c   :  { %1697 = vsyncpa [#allocation5], 1 }
 0xb5d   :  { %1699 = vsyncpa [#allocation5 + $0x1], 1 }

</bundles_post_ra>
